<compile_context>
chip_gen: v5e
topology: v5e:2x2
jax: 0.10.0
libtpu: 0.0.40
codegen_flags: <defaults>
</compile_context>

<pallas_src>
import functools

import numpy as np
import jax
import jax.numpy as jnp
from jax import lax
from jax.experimental import pallas as pl
from jax.experimental.pallas import tpu as pltpu

ATT_K = 5                      # att_conv kernel height (fixed 5 in PyTorch)
ATT_HALF = (ATT_K - 1) // 2
FRONT = 8                      # front zero-pad rows per slot (>= ATT_HALF)
TAIL = 8                       # tail zero-pad rows per slot (>= s_max - 1)
TARGET_TBS = 256               # aim for TB*S >= 256 (v6e/v7x MXU pass width)
NEG_INF = -1e30


def _textcnn_kernel(S, D, TB, TBS, s_max, C_pad, use_bf16,
                    ids_ref, table_ref, w_att_ref, b_att_ref, w_fused_ref,
                    bias_ref, limit_ref, o_ref, emb_buf, dma_sem):
    cdt = jnp.bfloat16 if use_bf16 else jnp.float32
    stride = FRONT + TBS + TAIL            # rows per double-buffer slot
    g = pl.program_id(0)
    slot = g % 2
    nslot = 1 - slot
    slot_off = slot * stride
    nslot_off = nslot * stride

    def issue_gather(tile, dst_off, sem):
        """One (1, D) row DMA per token of `tile` into emb_buf rows [dst_off+FRONT, ...)."""
        row0 = tile * TBS

        @pl.loop(0, TBS)
        def _(r):
            tok = ids_ref[row0 + r]
            pltpu.make_async_copy(
                table_ref.at[pl.ds(tok, 1)],
                emb_buf.at[pl.ds(dst_off + FRONT + r, 1)],
                sem).start()

    # One-time init: zero the pad rows of both slots and prime tile 0's gather.
    @pl.when(g == 0)
    def _():
        zf = jnp.zeros((FRONT, D), jnp.float32)
        zt = jnp.zeros((TAIL, D), jnp.float32)
        emb_buf[0:FRONT, :] = zf
        emb_buf[FRONT + TBS:stride, :] = zt
        emb_buf[stride:stride + FRONT, :] = zf
        emb_buf[stride + FRONT + TBS:, :] = zt
        issue_gather(0, 0, dma_sem.at[0])

    # Prefetch the NEXT tile's embedding rows into the other slot; these DMAs
    # overlap with this tile's remaining in-flight copies and its compute.
    @pl.when(g + 1 < pl.num_programs(0))
    def _():
        issue_gather(g + 1, nslot_off, dma_sem.at[nslot])

    # Single coalesced wait for this tile's TBS row copies (DMA semaphores
    # count bytes, so one (TBS, D) descriptor == TBS issued (1, D) copies).
    pltpu.make_async_copy(emb_buf.at[pl.ds(slot_off + FRONT, TBS)],
                          emb_buf.at[pl.ds(slot_off + FRONT, TBS)],
                          dma_sem.at[slot]).wait()

    posi = lax.broadcasted_iota(jnp.int32, (TBS, 1), 0) % S   # position in seq

    # ---- attention conv: Conv2d(1, 1, (5, D), padding=(2, 0)) + Sigmoid ----
    # 5 shifted, boundary-masked (TBS, D) @ (D, 128) MXU matmuls; the att
    # weight vector lives in lane 0 of each w_att_ref[kt].
    emb = None
    att_acc = jnp.zeros((TBS, 128), jnp.float32)
    for kt in range(ATT_K):
        off = kt - ATT_HALF
        x = emb_buf[pl.ds(slot_off + FRONT + off, TBS), :]        # (TBS, D)
        if off == 0:
            emb = x                                               # raw embeddings
        m = ((posi + off >= 0) & (posi + off < S)).astype(jnp.float32)
        att_acc = att_acc + jnp.dot((x * m).astype(cdt), w_att_ref[kt],
                                    preferred_element_type=jnp.float32)
    att = jax.nn.sigmoid(att_acc[:, 0:1] + b_att_ref[0, 0])       # (TBS, 1)

    # Reuse this slot's scratch rows for emb*att so the conv taps can read
    # shifted slices (front/tail pad rows stay zero).
    emb_buf[pl.ds(slot_off + FRONT, TBS), :] = emb * att

    # ---- fused convs: one (TBS, D) @ (D, C_pad) MXU matmul per tap ---------
    acc = jnp.zeros((TBS, C_pad), jnp.float32)
    for kt in range(s_max):
        x = emb_buf[pl.ds(slot_off + FRONT + kt, TBS), :]
        acc = acc + jnp.dot(x.astype(cdt), w_fused_ref[kt],
                            preferred_element_type=jnp.float32)

    # Bias + (-1e30) invalid-position mask, built in-kernel from (1, C_pad)
    # rows (position p is valid for a filter of size s iff p <= S - s).
    valid = posi.astype(jnp.float32) <= limit_ref[...]            # (TBS, C_pad)
    acc = acc + jnp.where(valid, bias_ref[...], NEG_INF)

    # ---- per-batch-element max pool over positions, then ReLU --------------
    # max(relu(x)) == relu(max(x)) (both monotone), so mask -> max -> relu.
    if S % 8 == 0:
        pooled = jnp.max(acc.reshape(TB, S, C_pad), axis=1)       # (TB, C_pad)
    else:
        pooled = jnp.concatenate(
            [jnp.max(acc[b * S:(b + 1) * S, :], axis=0, keepdims=True)
             for b in range(TB)], axis=0)
    # TODO(synk): nn.Dropout(0.5) is identity in eval mode; training-mode
    # dropout masking/scaling is not implemented here.
    o_ref[...] = jnp.maximum(pooled, 0.0)


def textcnn_forward(ids, emb_table, w_att, b_att, conv_ws, conv_bs,
                    filter_sizes, out_channel, *, batch_tile=None,
                    use_bf16=False):
    """TextCNN forward (eval mode). conv_ws[f]: (s_f, D, C); conv_bs[f]: (C,)."""
    B, S = ids.shape
    V, D = emb_table.shape
    nf = len(filter_sizes)
    C = out_channel
    out_dim = C * nf
    s_max = max(filter_sizes)
    assert ATT_HALF <= FRONT and s_max - 1 <= TAIL and S >= s_max

    # Batch tile: aim for TB*S >= TARGET_TBS but do not pad tiny batches;
    # multi-tile runs keep TB a multiple of 8 so (TB, C_pad) output blocks are
    # sublane-aligned.
    if batch_tile is None:
        TB = -(-TARGET_TBS // S)
        if TB >= B:
            TB = B
        else:
            TB = ((TB + 7) // 8) * 8
            TB = B if TB >= B else TB
    else:
        TB = batch_tile
    TB = max(int(TB), 1)
    B_pad = -(-B // TB) * TB
    num_tiles = B_pad // TB
    assert num_tiles == 1 or TB % 8 == 0, "multi-tile runs need TB % 8 == 0"
    TBS = TB * S
    C_pad = max(128, ((out_dim + 127) // 128) * 128)

    cdt = jnp.bfloat16 if use_bf16 else jnp.float32

    ids32 = jnp.asarray(ids, jnp.int32)
    if B_pad != B:
        ids32 = jnp.concatenate(
            [ids32, jnp.zeros((B_pad - B, S), jnp.int32)], axis=0)
    ids_flat = ids32.reshape(-1)              # 1-D: avoids 2-D SMEM padding

    # Embedding table stays in HBM; rows are DMA-gathered in-kernel.  Kept f32
    # so the row DMAs match emb_buf's dtype exactly.
    table = jnp.asarray(emb_table, jnp.float32)

    # Attention weight, zero-padded into lane 0 of a (D, 128) slab per tap.
    w_att_pad = jnp.zeros((ATT_K, D, 128), jnp.float32)
    w_att_pad = w_att_pad.at[:, :, 0].set(jnp.asarray(w_att, jnp.float32))
    w_att_pad = w_att_pad.astype(cdt)
    b_att2 = jnp.asarray(b_att, jnp.float32).reshape(1, 1)

    # Fused conv weights / bias / per-channel position limits.  PyTorch's
    # cat(dim=3)+view flattens (C, 1, nf) row-major, so output column = c*nf + f.
    w_fused = jnp.zeros((s_max, D, C_pad), jnp.float32)
    bias_vec = jnp.zeros((C_pad,), jnp.float32)
    limit = np.full((C_pad,), np.float32(S))   # pad channels: always valid -> 0 after ReLU
    for f, s in enumerate(filter_sizes):
        cols = np.arange(C) * nf + f
        w_fused = w_fused.at[:s, :, cols].set(jnp.asarray(conv_ws[f], jnp.float32))
        bias_vec = bias_vec.at[cols].set(jnp.asarray(conv_bs[f], jnp.float32))
        limit[cols] = np.float32(S - s)
    w_fused = w_fused.astype(cdt)
    bias_row = bias_vec.reshape(1, C_pad)
    limit_row = jnp.asarray(limit).reshape(1, C_pad)

    kernel = functools.partial(_textcnn_kernel, S, D, TB, TBS, s_max, C_pad,
                               use_bf16)

    stride = FRONT + TBS + TAIL
    wbytes = 2 if use_bf16 else 4
    vmem_est = (2 * stride * D * 4                                   # emb_buf
                + 2 * (s_max * D * C_pad + ATT_K * D * 128) * wbytes  # weights
                + 2 * (2 * C_pad * 4 + TB * C_pad * 4)                # rows + out
                + 6 * TBS * C_pad * 4)                                # acc/temps
    vmem_limit = int(min(96 * 2 ** 20, max(32 * 2 ** 20, 2 * vmem_est)))

    grid_spec = pltpu.PrefetchScalarGridSpec(
        num_scalar_prefetch=1,                                       # ids -> SMEM
        grid=(num_tiles,),
        in_specs=[
            pl.BlockSpec(memory_space=pl.ANY),                           # table (HBM)
            pl.BlockSpec((ATT_K, D, 128), lambda g, _ids: (0, 0, 0)),    # w_att_pad
            pl.BlockSpec(memory_space=pltpu.MemorySpace.SMEM),           # b_att
            pl.BlockSpec((s_max, D, C_pad), lambda g, _ids: (0, 0, 0)),  # fused W
            pl.BlockSpec((1, C_pad), lambda g, _ids: (0, 0)),            # bias row
            pl.BlockSpec((1, C_pad), lambda g, _ids: (0, 0)),            # limit row
        ],
        out_specs=pl.BlockSpec((TB, C_pad), lambda g, _ids: (g, 0)),
        scratch_shapes=[
            pltpu.VMEM((2 * stride, D), jnp.float32),   # double-buffered emb / emb*att
            pltpu.SemaphoreType.DMA((2,)),              # per-slot gather semaphores
        ],
    )

    out = pl.pallas_call(
        kernel,
        out_shape=jax.ShapeDtypeStruct((B_pad, C_pad), jnp.float32),
        grid_spec=grid_spec,
        compiler_params=pltpu.CompilerParams(
            # "arbitrary": scratch/semaphores carry the cross-step prefetch.
            dimension_semantics=("arbitrary",),
            vmem_limit_bytes=vmem_limit),
    )(ids_flat, table, w_att_pad, b_att2, w_fused, bias_row, limit_row)
    return out[:B, :out_dim]


def textcnn_reference(ids, emb_table, w_att, b_att, conv_ws, conv_bs,
                      filter_sizes, out_channel):
    """Pure-JAX reference mirroring the PyTorch forward (eval mode)."""
    B, S = ids.shape
    emb = emb_table[ids]                                           # (B, S, D)
    pad = ATT_HALF
    emb_pad = jnp.pad(emb, ((0, 0), (pad, pad), (0, 0)))
    att = jnp.zeros((B, S), jnp.float32)
    for kt in range(ATT_K):
        att = att + jnp.einsum('bsd,d->bs', emb_pad[:, kt:kt + S, :],
                               w_att[kt])
    att = jax.nn.sigmoid(att + b_att)[..., None]
    emb_att = emb * att
    pooled = []
    for s, w, bb in zip(filter_sizes, conv_ws, conv_bs):
        L = S - s + 1
        acc = jnp.zeros((B, L, out_channel), jnp.float32)
        for kt in range(s):
            acc = acc + jnp.einsum('bld,dc->blc', emb_att[:, kt:kt + L, :],
                                   w[kt])
        act = jnp.maximum(acc + bb[None, None, :], 0.0)
        pooled.append(jnp.max(act, axis=1))                        # (B, C)
    stacked = jnp.stack(pooled, axis=-1)                           # (B, C, nf)
    return stacked.reshape(B, out_channel * len(filter_sizes))


if __name__ == "__main__":
    key = jax.random.PRNGKey(0)
    k_emb, k_ids, k_att, *k_convs = jax.random.split(key, 6)

    batch = 2
    seq_len = 16
    word_dim = 32
    vocab_size = 50
    out_channel = 8
    filter_sizes = (3, 4, 5)

    # Deterministic parameters (mirrors reset_weights: initW for embedding,
    # uniform(-0.1, 0.1) conv weights, constant 0.1 biases).
    emb_table = jax.random.normal(k_emb, (vocab_size, word_dim),
                                  jnp.float32) * 0.1
    ids = jax.random.randint(k_ids, (batch, seq_len), 0, vocab_size,
                             dtype=jnp.int32)
    w_att = jax.random.uniform(k_att, (ATT_K, word_dim), jnp.float32,
                               -0.1, 0.1)
    b_att = jnp.float32(0.1)

    conv_ws, conv_bs = [], []
    for s, kc in zip(filter_sizes, k_convs):
        # PyTorch OIHW (C, 1, s, D) -> kernel layout (s, D, C)
        w_oihw = jax.random.uniform(kc, (out_channel, 1, s, word_dim),
                                    jnp.float32, -0.1, 0.1)
        conv_ws.append(jnp.transpose(w_oihw[:, 0], (1, 2, 0)))
        conv_bs.append(jnp.full((out_channel,), 0.1, jnp.float32))

    out = textcnn_forward(ids, emb_table, w_att, b_att, conv_ws, conv_bs,
                          filter_sizes, out_channel)
    out = jax.block_until_ready(out)

    ref = textcnn_reference(ids, emb_table, w_att, b_att, conv_ws, conv_bs,
                            filter_sizes, out_channel)
    np.testing.assert_allclose(np.asarray(out), np.asarray(ref),
                               rtol=1e-3, atol=1e-3)
    print("KERNEL_OK")
</pallas_src>

<mosaic_0001>
module attributes {stable_mosaic.version = 11 : i64} {
  func.func @_textcnn_kernel(%arg0: i32, %arg1: memref<32xi32, #tpu.memory_space<smem>>, %arg2: memref<50x32xf32, #tpu.memory_space<any>>, %arg3: memref<5x32x128xf32, #tpu.memory_space<vmem>>, %arg4: memref<1x1xf32, #tpu.memory_space<smem>>, %arg5: memref<5x32x128xf32, #tpu.memory_space<vmem>>, %arg6: memref<1x128xf32, #tpu.memory_space<vmem>>, %arg7: memref<1x128xf32, #tpu.memory_space<vmem>>, %arg8: memref<2x128xf32, #tpu.memory_space<vmem>>, %arg9: memref<96x32xf32, #tpu.memory_space<vmem>>, %arg10: memref<2x!tpu.dma_semaphore, #tpu.memory_space<semaphore_mem>>) attributes {dimension_semantics = [#tpu.dimension_semantics<arbitrary>], iteration_bounds = array<i64: 1>, scalar_prefetch = 1 : i64, scratch_operands = 2 : i64, tpu.core_type = #tpu.core_type<tc>, window_params = [{}, {pipeline_mode = #tpu.pipeline_mode<synchronous>, transform_indices = @transform_1, window_bounds = array<i64: 5, 32, 128>}, {transform_indices = @transform_2, window_bounds = array<i64: 1, 1>}, {pipeline_mode = #tpu.pipeline_mode<synchronous>, transform_indices = @transform_3, window_bounds = array<i64: 5, 32, 128>}, {pipeline_mode = #tpu.pipeline_mode<synchronous>, transform_indices = @transform_4, window_bounds = array<i64: 1, 128>}, {pipeline_mode = #tpu.pipeline_mode<synchronous>, transform_indices = @transform_5, window_bounds = array<i64: 1, 128>}, {transform_indices = @transform_6, window_bounds = array<i64: 2, 128>}]} {
    %c2_i32 = arith.constant 2 : i32
    %c0_i32 = arith.constant 0 : i32
    %0 = arith.cmpi eq, %c2_i32, %c0_i32 : i32
    %c1_i32 = arith.constant 1 : i32
    %1 = arith.select %0, %c1_i32, %c2_i32 : i32
    %2 = arith.remsi %arg0, %1 : i32
    %c0_i32_0 = arith.constant 0 : i32
    %3 = arith.cmpi ne, %2, %c0_i32_0 : i32
    %c0_i32_1 = arith.constant 0 : i32
    %4 = arith.cmpi slt, %2, %c0_i32_1 : i32
    %c0_i32_2 = arith.constant 0 : i32
    %5 = arith.cmpi slt, %1, %c0_i32_2 : i32
    %6 = arith.xori %4, %5 : i1
    %7 = arith.andi %6, %3 : i1
    %8 = arith.addi %2, %1 : i32
    %9 = arith.select %7, %8, %2 : i32
    %c1_i32_3 = arith.constant 1 : i32
    %10 = arith.subi %c1_i32_3, %9 : i32
    %c48_i32 = arith.constant 48 : i32
    %11 = arith.muli %9, %c48_i32 : i32
    %c48_i32_4 = arith.constant 48 : i32
    %12 = arith.muli %10, %c48_i32_4 : i32
    %c0_i32_5 = arith.constant 0 : i32
    %13 = arith.cmpi eq, %arg0, %c0_i32_5 : i32
    %14 = arith.extui %13 : i1 to i32
    %c0_i32_6 = arith.constant 0 : i32
    %15 = arith.cmpi ne, %14, %c0_i32_6 : i32
    scf.if %15 {
      %cst_114 = arith.constant 0.000000e+00 : f32
      %220 = vector.broadcast %cst_114 : f32 to vector<8x32xf32>
      %cst_115 = arith.constant 0.000000e+00 : f32
      %221 = vector.broadcast %cst_115 : f32 to vector<8x32xf32>
      %c0_116 = arith.constant 0 : index
      %c0_117 = arith.constant 0 : index
      %222 = vector.load %arg9[%c0_116, %c0_117] : memref<96x32xf32, #tpu.memory_space<vmem>>, vector<8x32xf32>
      tpu.vector_store %arg9[%c0_116, %c0_117], %220 {strides = array<i32>} : memref<96x32xf32, #tpu.memory_space<vmem>>, vector<8x32xf32>,
      %c40 = arith.constant 40 : index
      %c0_118 = arith.constant 0 : index
      %223 = vector.load %arg9[%c40, %c0_118] : memref<96x32xf32, #tpu.memory_space<vmem>>, vector<8x32xf32>
      tpu.vector_store %arg9[%c40, %c0_118], %221 {strides = array<i32>} : memref<96x32xf32, #tpu.memory_space<vmem>>, vector<8x32xf32>,
      %c48 = arith.constant 48 : index
      %c0_119 = arith.constant 0 : index
      %224 = vector.load %arg9[%c48, %c0_119] : memref<96x32xf32, #tpu.memory_space<vmem>>, vector<8x32xf32>
      tpu.vector_store %arg9[%c48, %c0_119], %220 {strides = array<i32>} : memref<96x32xf32, #tpu.memory_space<vmem>>, vector<8x32xf32>,
      %c88 = arith.constant 88 : index
      %c0_120 = arith.constant 0 : index
      %225 = vector.load %arg9[%c88, %c0_120] : memref<96x32xf32, #tpu.memory_space<vmem>>, vector<8x32xf32>
      tpu.vector_store %arg9[%c88, %c0_120], %221 {strides = array<i32>} : memref<96x32xf32, #tpu.memory_space<vmem>>, vector<8x32xf32>,
      %c0_i32_121 = arith.constant 0 : i32
      %c0_i32_122 = arith.constant 0 : i32
      %c32_i32 = arith.constant 32 : i32
      %226 = arith.addi %c0_i32_122, %c32_i32 : i32
      %c1_i32_123 = arith.constant 1 : i32
      scf.for %arg11 = %c0_i32_122 to %226 step %c1_i32_123  : i32 {
        %c1_i32_125 = arith.constant 1 : i32
        %227 = arith.muli %arg11, %c1_i32_125 : i32
        %c0_i32_126 = arith.constant 0 : i32
        %228 = arith.addi %c0_i32_126, %227 : i32
        %c0_i32_127 = arith.constant 0 : i32
        %229 = arith.addi %c0_i32_127, %228 : i32
        %230 = arith.index_cast %229 : i32 to index
        %231 = memref.load %arg1[%230] : memref<32xi32, #tpu.memory_space<smem>>
        %c8_i32_128 = arith.constant 8 : i32
        %232 = arith.addi %c8_i32_128, %228 : i32
        %c0_i32_129 = arith.constant 0 : i32
        %233 = tpu.memref_slice %arg2[%231, %c0_i32_129] : memref<50x32xf32, #tpu.memory_space<any>> -> memref<1x32xf32, #tpu.memory_space<any>>
        %c0_i32_130 = arith.constant 0 : i32
        %234 = tpu.memref_slice %arg9[%232, %c0_i32_130] : memref<96x32xf32, #tpu.memory_space<vmem>> -> memref<1x32xf32, #tpu.memory_space<vmem>>
        %235 = tpu.memref_slice %arg10[%c0_i32_121] : memref<2x!tpu.dma_semaphore, #tpu.memory_space<semaphore_mem>> -> memref<1x!tpu.dma_semaphore, #tpu.memory_space<semaphore_mem>>
        %236 = tpu.memref_squeeze %235 : memref<1x!tpu.dma_semaphore, #tpu.memory_space<semaphore_mem>> -> memref<!tpu.dma_semaphore, #tpu.memory_space<semaphore_mem>>
        tpu.enqueue_dma source(%233 : memref<1x32xf32, #tpu.memory_space<any>>) target(%234 : memref<1x32xf32, #tpu.memory_space<vmem>>) target_semaphore(%236 : memref<!tpu.dma_semaphore, #tpu.memory_space<semaphore_mem>>)
      }
      %c32_i32_124 = arith.constant 32 : i32
    } else {
    }
    %c1_i32_7 = arith.constant 1 : i32
    %16 = arith.addi %arg0, %c1_i32_7 : i32
    %c1_i32_8 = arith.constant 1 : i32
    %17 = arith.cmpi slt, %16, %c1_i32_8 : i32
    %18 = arith.extui %17 : i1 to i32
    %c0_i32_9 = arith.constant 0 : i32
    %19 = arith.cmpi ne, %18, %c0_i32_9 : i32
    scf.if %19 {
      %c1_i32_114 = arith.constant 1 : i32
      %220 = arith.addi %arg0, %c1_i32_114 : i32
      %c32_i32 = arith.constant 32 : i32
      %221 = arith.muli %220, %c32_i32 : i32
      %c0_i32_115 = arith.constant 0 : i32
      %c32_i32_116 = arith.constant 32 : i32
      %222 = arith.addi %c0_i32_115, %c32_i32_116 : i32
      %c1_i32_117 = arith.constant 1 : i32
      scf.for %arg11 = %c0_i32_115 to %222 step %c1_i32_117  : i32 {
        %c1_i32_119 = arith.constant 1 : i32
        %223 = arith.muli %arg11, %c1_i32_119 : i32
        %c0_i32_120 = arith.constant 0 : i32
        %224 = arith.addi %c0_i32_120, %223 : i32
        %225 = arith.addi %221, %224 : i32
        %226 = arith.index_cast %225 : i32 to index
        %227 = memref.load %arg1[%226] : memref<32xi32, #tpu.memory_space<smem>>
        %c8_i32_121 = arith.constant 8 : i32
        %228 = arith.addi %12, %c8_i32_121 : i32
        %229 = arith.addi %228, %224 : i32
        %c0_i32_122 = arith.constant 0 : i32
        %230 = tpu.memref_slice %arg2[%227, %c0_i32_122] : memref<50x32xf32, #tpu.memory_space<any>> -> memref<1x32xf32, #tpu.memory_space<any>>
        %c0_i32_123 = arith.constant 0 : i32
        %231 = tpu.memref_slice %arg9[%229, %c0_i32_123] : memref<96x32xf32, #tpu.memory_space<vmem>> -> memref<1x32xf32, #tpu.memory_space<vmem>>
        %232 = tpu.memref_slice %arg10[%10] : memref<2x!tpu.dma_semaphore, #tpu.memory_space<semaphore_mem>> -> memref<1x!tpu.dma_semaphore, #tpu.memory_space<semaphore_mem>>
        %233 = tpu.memref_squeeze %232 : memref<1x!tpu.dma_semaphore, #tpu.memory_space<semaphore_mem>> -> memref<!tpu.dma_semaphore, #tpu.memory_space<semaphore_mem>>
        tpu.enqueue_dma source(%230 : memref<1x32xf32, #tpu.memory_space<any>>) target(%231 : memref<1x32xf32, #tpu.memory_space<vmem>>) target_semaphore(%233 : memref<!tpu.dma_semaphore, #tpu.memory_space<semaphore_mem>>)
      }
      %c32_i32_118 = arith.constant 32 : i32
    } else {
    }
    %c8_i32 = arith.constant 8 : i32
    %20 = arith.addi %11, %c8_i32 : i32
    %c8_i32_10 = arith.constant 8 : i32
    %21 = arith.addi %11, %c8_i32_10 : i32
    %c0_i32_11 = arith.constant 0 : i32
    %22 = tpu.memref_slice %arg9[%20, %c0_i32_11] : memref<96x32xf32, #tpu.memory_space<vmem>> -> memref<32x32xf32, #tpu.memory_space<vmem>>
    %c0_i32_12 = arith.constant 0 : i32
    %23 = tpu.memref_slice %arg9[%21, %c0_i32_12] : memref<96x32xf32, #tpu.memory_space<vmem>> -> memref<32x32xf32, #tpu.memory_space<vmem>>
    %24 = tpu.memref_slice %arg10[%9] : memref<2x!tpu.dma_semaphore, #tpu.memory_space<semaphore_mem>> -> memref<1x!tpu.dma_semaphore, #tpu.memory_space<semaphore_mem>>
    %25 = tpu.memref_squeeze %24 : memref<1x!tpu.dma_semaphore, #tpu.memory_space<semaphore_mem>> -> memref<!tpu.dma_semaphore, #tpu.memory_space<semaphore_mem>>
    tpu.wait_dma2 semaphore(%25 : memref<!tpu.dma_semaphore, #tpu.memory_space<semaphore_mem>>) src(%22 : memref<32x32xf32, #tpu.memory_space<vmem>>) dst(%23 : memref<32x32xf32, #tpu.memory_space<vmem>>)
    %26 = tpu.iota {dimensions = array<i32: 0>} : vector<32x1xi32>
    %c16_i32 = arith.constant 16 : i32
    %c0_i32_13 = arith.constant 0 : i32
    %27 = arith.cmpi eq, %c16_i32, %c0_i32_13 : i32
    %c1_i32_14 = arith.constant 1 : i32
    %28 = arith.select %27, %c1_i32_14, %c16_i32 : i32
    %29 = vector.broadcast %28 : i32 to vector<32x1xi32>
    %30 = arith.remsi %26, %29 : vector<32x1xi32>
    %c0_i32_15 = arith.constant 0 : i32
    %31 = vector.broadcast %c0_i32_15 : i32 to vector<32x1xi32>
    %32 = arith.cmpi ne, %30, %31 : vector<32x1xi32>
    %c0_i32_16 = arith.constant 0 : i32
    %33 = vector.broadcast %c0_i32_16 : i32 to vector<32x1xi32>
    %34 = arith.cmpi slt, %30, %33 : vector<32x1xi32>
    %c0_i32_17 = arith.constant 0 : i32
    %35 = arith.cmpi slt, %28, %c0_i32_17 : i32
    %36 = vector.broadcast %35 : i1 to vector<32x1xi1>
    %37 = vector.broadcast %36 : vector<32x1xi1> to vector<32x1xi1>
    %38 = arith.xori %34, %37 : vector<32x1xi1>
    %39 = arith.andi %38, %32 : vector<32x1xi1>
    %40 = vector.broadcast %28 : i32 to vector<32x1xi32>
    %41 = arith.addi %30, %40 : vector<32x1xi32>
    %42 = arith.select %39, %41, %30 : vector<32x1xi1>, vector<32x1xi32>
    %cst = arith.constant 0.000000e+00 : f32
    %43 = vector.broadcast %cst : f32 to vector<32x128xf32>
    %c8_i32_18 = arith.constant 8 : i32
    %44 = arith.addi %11, %c8_i32_18 : i32
    %c-2_i32 = arith.constant -2 : i32
    %45 = arith.addi %44, %c-2_i32 : i32
    %46 = arith.index_cast %45 : i32 to index
    %c0 = arith.constant 0 : index
    %47 = vector.load %arg9[%46, %c0] : memref<96x32xf32, #tpu.memory_space<vmem>>, vector<32x32xf32>
    %c-2_i32_19 = arith.constant -2 : i32
    %48 = vector.broadcast %c-2_i32_19 : i32 to vector<32x1xi32>
    %49 = arith.addi %42, %48 : vector<32x1xi32>
    %c0_i32_20 = arith.constant 0 : i32
    %50 = vector.broadcast %c0_i32_20 : i32 to vector<32x1xi32>
    %51 = arith.cmpi sge, %49, %50 : vector<32x1xi32>
    %c-2_i32_21 = arith.constant -2 : i32
    %52 = vector.broadcast %c-2_i32_21 : i32 to vector<32x1xi32>
    %53 = arith.addi %42, %52 : vector<32x1xi32>
    %c16_i32_22 = arith.constant 16 : i32
    %54 = vector.broadcast %c16_i32_22 : i32 to vector<32x1xi32>
    %55 = arith.cmpi slt, %53, %54 : vector<32x1xi32>
    %56 = arith.andi %51, %55 : vector<32x1xi1>
    %57 = arith.extui %56 : vector<32x1xi1> to vector<32x1xi32>
    %58 = arith.sitofp %57 : vector<32x1xi32> to vector<32x1xf32>
    %59 = vector.broadcast %58 : vector<32x1xf32> to vector<32x32xf32>
    %60 = arith.mulf %47, %59 : vector<32x32xf32>
    %c0_23 = arith.constant 0 : index
    %c0_24 = arith.constant 0 : index
    %c0_25 = arith.constant 0 : index
    %61 = vector.load %arg3[%c0_23, %c0_24, %c0_25] : memref<5x32x128xf32, #tpu.memory_space<vmem>>, vector<1x32x128xf32>
    %62 = vector.shape_cast %61 : vector<1x32x128xf32> to vector<32x128xf32>
    %cst_26 = arith.constant dense<0.000000e+00> : vector<32x128xf32>
    %63 = tpu.matmul %60, %62, %cst_26 {dimension_numbers = #tpu.dot_dimension_numbers<[1], [0], [0], [1], [0, 0, 1, 1], [], []>} : vector<32x32xf32>, vector<32x128xf32>, vector<32x128xf32> -> vector<32x128xf32>
    %64 = arith.addf %43, %63 : vector<32x128xf32>
    %c8_i32_27 = arith.constant 8 : i32
    %65 = arith.addi %11, %c8_i32_27 : i32
    %c-1_i32 = arith.constant -1 : i32
    %66 = arith.addi %65, %c-1_i32 : i32
    %67 = arith.index_cast %66 : i32 to index
    %c0_28 = arith.constant 0 : index
    %68 = vector.load %arg9[%67, %c0_28] : memref<96x32xf32, #tpu.memory_space<vmem>>, vector<32x32xf32>
    %c-1_i32_29 = arith.constant -1 : i32
    %69 = vector.broadcast %c-1_i32_29 : i32 to vector<32x1xi32>
    %70 = arith.addi %42, %69 : vector<32x1xi32>
    %c0_i32_30 = arith.constant 0 : i32
    %71 = vector.broadcast %c0_i32_30 : i32 to vector<32x1xi32>
    %72 = arith.cmpi sge, %70, %71 : vector<32x1xi32>
    %c-1_i32_31 = arith.constant -1 : i32
    %73 = vector.broadcast %c-1_i32_31 : i32 to vector<32x1xi32>
    %74 = arith.addi %42, %73 : vector<32x1xi32>
    %c16_i32_32 = arith.constant 16 : i32
    %75 = vector.broadcast %c16_i32_32 : i32 to vector<32x1xi32>
    %76 = arith.cmpi slt, %74, %75 : vector<32x1xi32>
    %77 = arith.andi %72, %76 : vector<32x1xi1>
    %78 = arith.extui %77 : vector<32x1xi1> to vector<32x1xi32>
    %79 = arith.sitofp %78 : vector<32x1xi32> to vector<32x1xf32>
    %80 = vector.broadcast %79 : vector<32x1xf32> to vector<32x32xf32>
    %81 = arith.mulf %68, %80 : vector<32x32xf32>
    %c1 = arith.constant 1 : index
    %c0_33 = arith.constant 0 : index
    %c0_34 = arith.constant 0 : index
    %82 = vector.load %arg3[%c1, %c0_33, %c0_34] : memref<5x32x128xf32, #tpu.memory_space<vmem>>, vector<1x32x128xf32>
    %83 = vector.shape_cast %82 : vector<1x32x128xf32> to vector<32x128xf32>
    %cst_35 = arith.constant dense<0.000000e+00> : vector<32x128xf32>
    %84 = tpu.matmul %81, %83, %cst_35 {dimension_numbers = #tpu.dot_dimension_numbers<[1], [0], [0], [1], [0, 0, 1, 1], [], []>} : vector<32x32xf32>, vector<32x128xf32>, vector<32x128xf32> -> vector<32x128xf32>
    %85 = arith.addf %64, %84 : vector<32x128xf32>
    %c8_i32_36 = arith.constant 8 : i32
    %86 = arith.addi %11, %c8_i32_36 : i32
    %c0_i32_37 = arith.constant 0 : i32
    %87 = arith.addi %86, %c0_i32_37 : i32
    %88 = arith.index_cast %87 : i32 to index
    %c0_38 = arith.constant 0 : index
    %89 = vector.load %arg9[%88, %c0_38] : memref<96x32xf32, #tpu.memory_space<vmem>>, vector<32x32xf32>
    %c0_i32_39 = arith.constant 0 : i32
    %90 = vector.broadcast %c0_i32_39 : i32 to vector<32x1xi32>
    %91 = arith.addi %42, %90 : vector<32x1xi32>
    %c0_i32_40 = arith.constant 0 : i32
    %92 = vector.broadcast %c0_i32_40 : i32 to vector<32x1xi32>
    %93 = arith.cmpi sge, %91, %92 : vector<32x1xi32>
    %c0_i32_41 = arith.constant 0 : i32
    %94 = vector.broadcast %c0_i32_41 : i32 to vector<32x1xi32>
    %95 = arith.addi %42, %94 : vector<32x1xi32>
    %c16_i32_42 = arith.constant 16 : i32
    %96 = vector.broadcast %c16_i32_42 : i32 to vector<32x1xi32>
    %97 = arith.cmpi slt, %95, %96 : vector<32x1xi32>
    %98 = arith.andi %93, %97 : vector<32x1xi1>
    %99 = arith.extui %98 : vector<32x1xi1> to vector<32x1xi32>
    %100 = arith.sitofp %99 : vector<32x1xi32> to vector<32x1xf32>
    %101 = vector.broadcast %100 : vector<32x1xf32> to vector<32x32xf32>
    %102 = arith.mulf %89, %101 : vector<32x32xf32>
    %c2 = arith.constant 2 : index
    %c0_43 = arith.constant 0 : index
    %c0_44 = arith.constant 0 : index
    %103 = vector.load %arg3[%c2, %c0_43, %c0_44] : memref<5x32x128xf32, #tpu.memory_space<vmem>>, vector<1x32x128xf32>
    %104 = vector.shape_cast %103 : vector<1x32x128xf32> to vector<32x128xf32>
    %cst_45 = arith.constant dense<0.000000e+00> : vector<32x128xf32>
    %105 = tpu.matmul %102, %104, %cst_45 {dimension_numbers = #tpu.dot_dimension_numbers<[1], [0], [0], [1], [0, 0, 1, 1], [], []>} : vector<32x32xf32>, vector<32x128xf32>, vector<32x128xf32> -> vector<32x128xf32>
    %106 = arith.addf %85, %105 : vector<32x128xf32>
    %c8_i32_46 = arith.constant 8 : i32
    %107 = arith.addi %11, %c8_i32_46 : i32
    %c1_i32_47 = arith.constant 1 : i32
    %108 = arith.addi %107, %c1_i32_47 : i32
    %109 = arith.index_cast %108 : i32 to index
    %c0_48 = arith.constant 0 : index
    %110 = vector.load %arg9[%109, %c0_48] : memref<96x32xf32, #tpu.memory_space<vmem>>, vector<32x32xf32>
    %c1_i32_49 = arith.constant 1 : i32
    %111 = vector.broadcast %c1_i32_49 : i32 to vector<32x1xi32>
    %112 = arith.addi %42, %111 : vector<32x1xi32>
    %c0_i32_50 = arith.constant 0 : i32
    %113 = vector.broadcast %c0_i32_50 : i32 to vector<32x1xi32>
    %114 = arith.cmpi sge, %112, %113 : vector<32x1xi32>
    %c1_i32_51 = arith.constant 1 : i32
    %115 = vector.broadcast %c1_i32_51 : i32 to vector<32x1xi32>
    %116 = arith.addi %42, %115 : vector<32x1xi32>
    %c16_i32_52 = arith.constant 16 : i32
    %117 = vector.broadcast %c16_i32_52 : i32 to vector<32x1xi32>
    %118 = arith.cmpi slt, %116, %117 : vector<32x1xi32>
    %119 = arith.andi %114, %118 : vector<32x1xi1>
    %120 = arith.extui %119 : vector<32x1xi1> to vector<32x1xi32>
    %121 = arith.sitofp %120 : vector<32x1xi32> to vector<32x1xf32>
    %122 = vector.broadcast %121 : vector<32x1xf32> to vector<32x32xf32>
    %123 = arith.mulf %110, %122 : vector<32x32xf32>
    %c3 = arith.constant 3 : index
    %c0_53 = arith.constant 0 : index
    %c0_54 = arith.constant 0 : index
    %124 = vector.load %arg3[%c3, %c0_53, %c0_54] : memref<5x32x128xf32, #tpu.memory_space<vmem>>, vector<1x32x128xf32>
    %125 = vector.shape_cast %124 : vector<1x32x128xf32> to vector<32x128xf32>
    %cst_55 = arith.constant dense<0.000000e+00> : vector<32x128xf32>
    %126 = tpu.matmul %123, %125, %cst_55 {dimension_numbers = #tpu.dot_dimension_numbers<[1], [0], [0], [1], [0, 0, 1, 1], [], []>} : vector<32x32xf32>, vector<32x128xf32>, vector<32x128xf32> -> vector<32x128xf32>
    %127 = arith.addf %106, %126 : vector<32x128xf32>
    %c8_i32_56 = arith.constant 8 : i32
    %128 = arith.addi %11, %c8_i32_56 : i32
    %c2_i32_57 = arith.constant 2 : i32
    %129 = arith.addi %128, %c2_i32_57 : i32
    %130 = arith.index_cast %129 : i32 to index
    %c0_58 = arith.constant 0 : index
    %131 = vector.load %arg9[%130, %c0_58] : memref<96x32xf32, #tpu.memory_space<vmem>>, vector<32x32xf32>
    %c2_i32_59 = arith.constant 2 : i32
    %132 = vector.broadcast %c2_i32_59 : i32 to vector<32x1xi32>
    %133 = arith.addi %42, %132 : vector<32x1xi32>
    %c0_i32_60 = arith.constant 0 : i32
    %134 = vector.broadcast %c0_i32_60 : i32 to vector<32x1xi32>
    %135 = arith.cmpi sge, %133, %134 : vector<32x1xi32>
    %c2_i32_61 = arith.constant 2 : i32
    %136 = vector.broadcast %c2_i32_61 : i32 to vector<32x1xi32>
    %137 = arith.addi %42, %136 : vector<32x1xi32>
    %c16_i32_62 = arith.constant 16 : i32
    %138 = vector.broadcast %c16_i32_62 : i32 to vector<32x1xi32>
    %139 = arith.cmpi slt, %137, %138 : vector<32x1xi32>
    %140 = arith.andi %135, %139 : vector<32x1xi1>
    %141 = arith.extui %140 : vector<32x1xi1> to vector<32x1xi32>
    %142 = arith.sitofp %141 : vector<32x1xi32> to vector<32x1xf32>
    %143 = vector.broadcast %142 : vector<32x1xf32> to vector<32x32xf32>
    %144 = arith.mulf %131, %143 : vector<32x32xf32>
    %c4 = arith.constant 4 : index
    %c0_63 = arith.constant 0 : index
    %c0_64 = arith.constant 0 : index
    %145 = vector.load %arg3[%c4, %c0_63, %c0_64] : memref<5x32x128xf32, #tpu.memory_space<vmem>>, vector<1x32x128xf32>
    %146 = vector.shape_cast %145 : vector<1x32x128xf32> to vector<32x128xf32>
    %cst_65 = arith.constant dense<0.000000e+00> : vector<32x128xf32>
    %147 = tpu.matmul %144, %146, %cst_65 {dimension_numbers = #tpu.dot_dimension_numbers<[1], [0], [0], [1], [0, 0, 1, 1], [], []>} : vector<32x32xf32>, vector<32x128xf32>, vector<32x128xf32> -> vector<32x128xf32>
    %148 = arith.addf %127, %147 : vector<32x128xf32>
    %149 = vector.extract_strided_slice %148 {offsets = [0, 0], sizes = [32, 1], strides = [1, 1]} : vector<32x128xf32> to vector<32x1xf32>
    %c0_66 = arith.constant 0 : index
    %c0_67 = arith.constant 0 : index
    %150 = memref.load %arg4[%c0_66, %c0_67] : memref<1x1xf32, #tpu.memory_space<smem>>
    %151 = vector.broadcast %150 : f32 to vector<32x1xf32>
    %152 = arith.addf %149, %151 : vector<32x1xf32>
    %153 = arith.negf %152 : vector<32x1xf32>
    %154 = math.exp %153 : vector<32x1xf32>
    %cst_68 = arith.constant 1.000000e+00 : f32
    %155 = vector.broadcast %cst_68 : f32 to vector<32x1xf32>
    %156 = arith.addf %155, %154 : vector<32x1xf32>
    %157 = arith.divf %155, %156 : vector<32x1xf32>
    %158 = vector.broadcast %157 : vector<32x1xf32> to vector<32x32xf32>
    %159 = arith.mulf %89, %158 : vector<32x32xf32>
    %c8_i32_69 = arith.constant 8 : i32
    %160 = arith.addi %11, %c8_i32_69 : i32
    %161 = arith.index_cast %160 : i32 to index
    %c0_70 = arith.constant 0 : index
    %162 = vector.load %arg9[%161, %c0_70] : memref<96x32xf32, #tpu.memory_space<vmem>>, vector<32x32xf32>
    tpu.vector_store %arg9[%161, %c0_70], %159 {strides = array<i32>} : memref<96x32xf32, #tpu.memory_space<vmem>>, vector<32x32xf32>,
    %cst_71 = arith.constant 0.000000e+00 : f32
    %163 = vector.broadcast %cst_71 : f32 to vector<32x128xf32>
    %c8_i32_72 = arith.constant 8 : i32
    %164 = arith.addi %11, %c8_i32_72 : i32
    %c0_i32_73 = arith.constant 0 : i32
    %165 = arith.addi %164, %c0_i32_73 : i32
    %166 = arith.index_cast %165 : i32 to index
    %c0_74 = arith.constant 0 : index
    %167 = vector.load %arg9[%166, %c0_74] : memref<96x32xf32, #tpu.memory_space<vmem>>, vector<32x32xf32>
    %c0_75 = arith.constant 0 : index
    %c0_76 = arith.constant 0 : index
    %c0_77 = arith.constant 0 : index
    %168 = vector.load %arg5[%c0_75, %c0_76, %c0_77] : memref<5x32x128xf32, #tpu.memory_space<vmem>>, vector<1x32x128xf32>
    %169 = vector.shape_cast %168 : vector<1x32x128xf32> to vector<32x128xf32>
    %cst_78 = arith.constant dense<0.000000e+00> : vector<32x128xf32>
    %170 = tpu.matmul %167, %169, %cst_78 {dimension_numbers = #tpu.dot_dimension_numbers<[1], [0], [0], [1], [0, 0, 1, 1], [], []>} : vector<32x32xf32>, vector<32x128xf32>, vector<32x128xf32> -> vector<32x128xf32>
    %171 = arith.addf %163, %170 : vector<32x128xf32>
    %c8_i32_79 = arith.constant 8 : i32
    %172 = arith.addi %11, %c8_i32_79 : i32
    %c1_i32_80 = arith.constant 1 : i32
    %173 = arith.addi %172, %c1_i32_80 : i32
    %174 = arith.index_cast %173 : i32 to index
    %c0_81 = arith.constant 0 : index
    %175 = vector.load %arg9[%174, %c0_81] : memref<96x32xf32, #tpu.memory_space<vmem>>, vector<32x32xf32>
    %c1_82 = arith.constant 1 : index
    %c0_83 = arith.constant 0 : index
    %c0_84 = arith.constant 0 : index
    %176 = vector.load %arg5[%c1_82, %c0_83, %c0_84] : memref<5x32x128xf32, #tpu.memory_space<vmem>>, vector<1x32x128xf32>
    %177 = vector.shape_cast %176 : vector<1x32x128xf32> to vector<32x128xf32>
    %cst_85 = arith.constant dense<0.000000e+00> : vector<32x128xf32>
    %178 = tpu.matmul %175, %177, %cst_85 {dimension_numbers = #tpu.dot_dimension_numbers<[1], [0], [0], [1], [0, 0, 1, 1], [], []>} : vector<32x32xf32>, vector<32x128xf32>, vector<32x128xf32> -> vector<32x128xf32>
    %179 = arith.addf %171, %178 : vector<32x128xf32>
    %c8_i32_86 = arith.constant 8 : i32
    %180 = arith.addi %11, %c8_i32_86 : i32
    %c2_i32_87 = arith.constant 2 : i32
    %181 = arith.addi %180, %c2_i32_87 : i32
    %182 = arith.index_cast %181 : i32 to index
    %c0_88 = arith.constant 0 : index
    %183 = vector.load %arg9[%182, %c0_88] : memref<96x32xf32, #tpu.memory_space<vmem>>, vector<32x32xf32>
    %c2_89 = arith.constant 2 : index
    %c0_90 = arith.constant 0 : index
    %c0_91 = arith.constant 0 : index
    %184 = vector.load %arg5[%c2_89, %c0_90, %c0_91] : memref<5x32x128xf32, #tpu.memory_space<vmem>>, vector<1x32x128xf32>
    %185 = vector.shape_cast %184 : vector<1x32x128xf32> to vector<32x128xf32>
    %cst_92 = arith.constant dense<0.000000e+00> : vector<32x128xf32>
    %186 = tpu.matmul %183, %185, %cst_92 {dimension_numbers = #tpu.dot_dimension_numbers<[1], [0], [0], [1], [0, 0, 1, 1], [], []>} : vector<32x32xf32>, vector<32x128xf32>, vector<32x128xf32> -> vector<32x128xf32>
    %187 = arith.addf %179, %186 : vector<32x128xf32>
    %c8_i32_93 = arith.constant 8 : i32
    %188 = arith.addi %11, %c8_i32_93 : i32
    %c3_i32 = arith.constant 3 : i32
    %189 = arith.addi %188, %c3_i32 : i32
    %190 = arith.index_cast %189 : i32 to index
    %c0_94 = arith.constant 0 : index
    %191 = vector.load %arg9[%190, %c0_94] : memref<96x32xf32, #tpu.memory_space<vmem>>, vector<32x32xf32>
    %c3_95 = arith.constant 3 : index
    %c0_96 = arith.constant 0 : index
    %c0_97 = arith.constant 0 : index
    %192 = vector.load %arg5[%c3_95, %c0_96, %c0_97] : memref<5x32x128xf32, #tpu.memory_space<vmem>>, vector<1x32x128xf32>
    %193 = vector.shape_cast %192 : vector<1x32x128xf32> to vector<32x128xf32>
    %cst_98 = arith.constant dense<0.000000e+00> : vector<32x128xf32>
    %194 = tpu.matmul %191, %193, %cst_98 {dimension_numbers = #tpu.dot_dimension_numbers<[1], [0], [0], [1], [0, 0, 1, 1], [], []>} : vector<32x32xf32>, vector<32x128xf32>, vector<32x128xf32> -> vector<32x128xf32>
    %195 = arith.addf %187, %194 : vector<32x128xf32>
    %c8_i32_99 = arith.constant 8 : i32
    %196 = arith.addi %11, %c8_i32_99 : i32
    %c4_i32 = arith.constant 4 : i32
    %197 = arith.addi %196, %c4_i32 : i32
    %198 = arith.index_cast %197 : i32 to index
    %c0_100 = arith.constant 0 : index
    %199 = vector.load %arg9[%198, %c0_100] : memref<96x32xf32, #tpu.memory_space<vmem>>, vector<32x32xf32>
    %c4_101 = arith.constant 4 : index
    %c0_102 = arith.constant 0 : index
    %c0_103 = arith.constant 0 : index
    %200 = vector.load %arg5[%c4_101, %c0_102, %c0_103] : memref<5x32x128xf32, #tpu.memory_space<vmem>>, vector<1x32x128xf32>
    %201 = vector.shape_cast %200 : vector<1x32x128xf32> to vector<32x128xf32>
    %cst_104 = arith.constant dense<0.000000e+00> : vector<32x128xf32>
    %202 = tpu.matmul %199, %201, %cst_104 {dimension_numbers = #tpu.dot_dimension_numbers<[1], [0], [0], [1], [0, 0, 1, 1], [], []>} : vector<32x32xf32>, vector<32x128xf32>, vector<32x128xf32> -> vector<32x128xf32>
    %203 = arith.addf %195, %202 : vector<32x128xf32>
    %204 = arith.sitofp %42 : vector<32x1xi32> to vector<32x1xf32>
    %c0_105 = arith.constant 0 : index
    %c0_106 = arith.constant 0 : index
    %205 = vector.load %arg7[%c0_105, %c0_106] : memref<1x128xf32, #tpu.memory_space<vmem>>, vector<1x128xf32>
    %206 = vector.broadcast %204 : vector<32x1xf32> to vector<32x128xf32>
    %207 = vector.broadcast %205 : vector<1x128xf32> to vector<32x128xf32>
    %208 = arith.cmpf ole, %206, %207 : vector<32x128xf32>
    %c0_107 = arith.constant 0 : index
    %c0_108 = arith.constant 0 : index
    %209 = vector.load %arg6[%c0_107, %c0_108] : memref<1x128xf32, #tpu.memory_space<vmem>>, vector<1x128xf32>
    %cst_109 = arith.constant -1.000000e+30 : f32
    %210 = vector.shape_cast %209 : vector<1x128xf32> to vector<1x128xf32>
    %211 = vector.broadcast %210 : vector<1x128xf32> to vector<32x128xf32>
    %212 = vector.broadcast %cst_109 : f32 to vector<32x128xf32>
    %213 = arith.select %208, %211, %212 : vector<32x128xi1>, vector<32x128xf32>
    %214 = arith.addf %203, %213 : vector<32x128xf32>
    %215 = vector.shape_cast %214 : vector<32x128xf32> to vector<2x16x128xf32>
    %cst_110 = arith.constant dense<0xFF800000> : vector<2x128xf32>
    %216 = vector.multi_reduction <maximumf>, %215, %cst_110 [1] : vector<2x16x128xf32> to vector<2x128xf32>
    %cst_111 = arith.constant 0.000000e+00 : f32
    %217 = vector.broadcast %cst_111 : f32 to vector<2x128xf32>
    %218 = arith.maximumf %216, %217 : vector<2x128xf32>
    %c0_112 = arith.constant 0 : index
    %c0_113 = arith.constant 0 : index
    %219 = vector.load %arg8[%c0_112, %c0_113] : memref<2x128xf32, #tpu.memory_space<vmem>>, vector<2x128xf32>
    tpu.vector_store %arg8[%c0_112, %c0_113], %218 {strides = array<i32>} : memref<2x128xf32, #tpu.memory_space<vmem>>, vector<2x128xf32>,
    return
  }
  func.func @transform_1(%arg0: i32, %arg1: memref<32xi32, #tpu.memory_space<smem>>) -> (i32, i32, i32) {
    %c0_i32 = arith.constant 0 : i32
    %c0_i32_0 = arith.constant 0 : i32
    %c0_i32_1 = arith.constant 0 : i32
    %c0_i32_2 = arith.constant 0 : i32
    return %c0_i32, %c0_i32_0, %c0_i32_1 : i32, i32, i32
  }
  func.func @transform_2(%arg0: i32, %arg1: memref<32xi32, #tpu.memory_space<smem>>) -> (i32, i32) {
    %c0_i32 = arith.constant 0 : i32
    %c0_i32_0 = arith.constant 0 : i32
    %c0_i32_1 = arith.constant 0 : i32
    return %c0_i32, %c0_i32_0 : i32, i32
  }
  func.func @transform_3(%arg0: i32, %arg1: memref<32xi32, #tpu.memory_space<smem>>) -> (i32, i32, i32) {
    %c0_i32 = arith.constant 0 : i32
    %c0_i32_0 = arith.constant 0 : i32
    %c0_i32_1 = arith.constant 0 : i32
    %c0_i32_2 = arith.constant 0 : i32
    return %c0_i32, %c0_i32_0, %c0_i32_1 : i32, i32, i32
  }
  func.func @transform_4(%arg0: i32, %arg1: memref<32xi32, #tpu.memory_space<smem>>) -> (i32, i32) {
    %c0_i32 = arith.constant 0 : i32
    %c0_i32_0 = arith.constant 0 : i32
    %c0_i32_1 = arith.constant 0 : i32
    return %c0_i32, %c0_i32_0 : i32, i32
  }
  func.func @transform_5(%arg0: i32, %arg1: memref<32xi32, #tpu.memory_space<smem>>) -> (i32, i32) {
    %c0_i32 = arith.constant 0 : i32
    %c0_i32_0 = arith.constant 0 : i32
    %c0_i32_1 = arith.constant 0 : i32
    return %c0_i32, %c0_i32_0 : i32, i32
  }
  func.func @transform_6(%arg0: i32, %arg1: memref<32xi32, #tpu.memory_space<smem>>) -> (i32, i32) {
    %c0_i32 = arith.constant 0 : i32
    %c0_i32_0 = arith.constant 0 : i32
    return %arg0, %c0_i32 : i32, i32
  }
}

</mosaic_0001>

<bundles_post_ra>
// kernel: tpu_custom_call.1
= control target key start
LH: loop header
LB: loop body
LE: loop exit
PB: predicated region body
PF: predicated region fallthrough
CT: control target
= control target key end

     0   :  { %s1354_s29 = smov [#allocation5]   ;;  %s1526_s0 = inlined_call_operand.vmem [shape: s32[32], index: 0, kind: input, shape index: {}]   ;;  %s1527_s1 = inlined_call_operand.vmem [shape: f32[50,32], index: 1, kind: input, shape index: {}]   ;;  %s1528_s2 = inlined_call_operand.hbm [shape: f32[5,32,128], index: 2, kind: input, shape index: {}]   ;;  %s1529_s3 = inlined_call_operand.<no memory space> [shape: f32[1,1], index: 3, kind: input, shape index: {}]   ;;  %s1530_s4 = inlined_call_operand.hbm [shape: f32[5,32,128], index: 4, kind: input, shape index: {}]   ;;  %s1531_s5 = inlined_call_operand.vmem [shape: f32[1,128], index: 5, kind: input, shape index: {}]   ;;  %s1532_s6 = inlined_call_operand.vmem [shape: f32[1,128], index: 6, kind: input, shape index: {}]   ;;  %s1533_s7 = inlined_call_operand.hbm [shape: f32[2,128], index: 7, kind: output, shape index: {}]  }
   0x1   :  { %s13_s26 = sshll.u32 %s1526_s0, 4  ;;  %17 = sst [smem:[#allocation6]] %s1529_s3  ;;  %s14_s26 = int_to_ptr.vmem [resolvable:$true] %s13_s26 }
   0x2   :  { %16 = dma.vmem_to_smem %s14_s26, 16, %s1354_s29, [#allocation4] }
   0x3   :  { %1340 = dma.done.wait [#allocation4], 16 }
   0x4   :  { %1341 = vsyncadd [#allocation4], 4294967280 }
   0x5   :  { %20 = sfence }
   0x6   :  { %21 = vsyncpa [#allocation8], 0 }
   0x7   :  { %22 = vsyncpa [#allocation11], 0 }
   0x8   :  { %23 = vsyncpa [#allocation9], 0  ;;  %s28_s9 = sshll.u32 %s1528_s2, 4  ;;  %s1355_s10 = smov [#allocation7]   ;;  %s29_s9 = int_to_ptr.hbm [resolvable:$true] %s28_s9 }
   0x9   :  { %s30_s0 = sshll.u32 %s1355_s10, 4  ;;  %s43_s3 = sshll.u32 %s1530_s4, 4  ;;  %s31_s0 = int_to_ptr.vmem [resolvable:$true] %s30_s0  ;;  %s44_s3 = int_to_ptr.hbm [resolvable:$true] %s43_s3 }
   0xa   :  { %s1356_s13 = smov 128   ;;  %s1357_s14 = smov 8  }
   0xb   :  { %36 = dma.hbm_to_vmem [thread:$0]  %s29_s9, 2560, %s31_s0, [#allocation8], %s1356_s13, %s1356_s13, %s1357_s14  }
   0xc   :  { %s1358_s15 = smov [#allocation10]  }
   0xd   :  { %s45_s16 = sshll.u32 %s1358_s15, 4  ;;  %s46_s16 = int_to_ptr.vmem [resolvable:$true] %s45_s16 }
   0xe   :  { %51 = dma.hbm_to_vmem [thread:$0]  %s44_s3, 2560, %s46_s16, [#allocation11], %s1356_s13, %s1356_s13, %s1357_s14  }
   0xf   :  { %1342 = dma.done.wait [#allocation8], 2560  }
  0x10   :  { %1343 = vsyncadd [#allocation8], 4294964736 }
  0x11   :  { %1344 = dma.done.wait [#allocation11], 2560  }
  0x12   :  { %1345 = vsyncadd [#allocation11], 4294964736  ;;  %vm79_vm0 = vcmask 261120   ;;  %v1359_v0 = vmov 0.0   ;;  %s1350_s2 = smov 0  }
  0x13   :  { %80 = vst.msk [vmem:[#allocation2] sm:$0xff] %vm79_vm0, %v1359_v0 }
  0x14   :  { %81 = vst.msk [vmem:[#allocation2 + $0x28] sm:$0xff] %vm79_vm0, %v1359_v0 }
  0x15 LB: > { %s90_s4 = sld [smem:[#allocation5 + %s1352_s2]]  ;;  %s1099_s20 = scalar_lea.vmem [#allocation2], %s1352_s2  ;;  %s1352_s2 = sphi %s1350_s2, %s89_s2  }
  0x1b   : > { %s92_s19 = scalar_lea.vmem %s1527_s1, %s90_s4 }
  0x1c   : > { %v108_v1 = vld [vmem:[%s92_s19] sm:$0x1] }
  0x1d   : > { %1147 = vst [vmem:[%s1099_s20 + $0x8] sm:$0x1] %v108_v1 }
  0x1e   : > { %127 = vsyncadd [#allocation3], 16  ;;  %s89_s2 = sadd.s32 1, %s1352_s2  }
  0x1f   : > { %p86_p0 = scmp.ge.s32.totalorder %s89_s2, 32  }
  0x21   :  { %88 = sbr.rel (!%p86_p0) target bundleno = 21 (0x15), region = 160 }
  0x26   :  { %1346 = dma.done.wait [#allocation3], 512 }
  0x27   :  { %1347 = vsyncadd [#allocation3], 4294966784  ;;  %v186_v2 = vlaneseq  ;;  %v315_v9 = vld [vmem:[#allocation7 + $0x38] sm:$0xff]  ;;  %v314_v11 = vld [vmem:[#allocation7 + $0x30] sm:$0xff]  ;;  %s646_s1 = sld [smem:[#allocation6]]  ;;  %s1074_s27 = sshll.u32 %s1533_s7, 4  ;;  %s1075_s27 = int_to_ptr.hbm [resolvable:$true] %s1074_s27 }
  0x28   :  { %v276_v10 = vld [vmem:[#allocation7 + $0x18] sm:$0xff]  ;;  %1208 = vmatpush.msra.mxu2 %v315_v9  ;;  %v275_v12 = vld [vmem:[#allocation7 + $0x10] sm:$0xff]  ;;  %v313_v15 = vld [vmem:[#allocation7 + $0x28] sm:$0xff]  ;;  %341 = vmatpush.msra.mxu0 %v315_v9 }
  0x29   :  { %v1421_v3 = vshrl.u32 %v186_v2, 7  ;;  %1212 = vmatpush.msra.mxu3 %v276_v10  ;;  %v274_v16 = vld [vmem:[#allocation7 + $0x8] sm:$0xff]  ;;  %v281_v17 = vld [vmem:[#allocation2 + $0x17] sm:$0xff]  ;;  %382 = vmatpush.msra.mxu1 %v276_v10  ;;  %v312_v19 = vld [vmem:[#allocation7 + $0x20] sm:$0xff] }
  0x2a   :  { %1209 = vmatpush.msra.mxu2 %v314_v11  ;;  %v243_v18 = vld [vmem:[#allocation2 + $0x16] sm:$0xff]  ;;  %v273_v20 = vld [vmem:[#allocation7] sm:$0xff]  ;;  %342 = vmatpush.msra.mxu0 %v314_v11  ;;  %v430_v35 = vld [vmem:[#allocation7 + $0x48] sm:$0xff] }
  0x2b   :  { %v189_v4 = vadd.s32 16, %v1421_v3  ;;  %v1425_v5 = vand.u32 15, %v1421_v3  ;;  %1213 = vmatpush.msra.mxu3 %v275_v12  ;;  %383 = vmatpush.msra.mxu1 %v275_v12  ;;  %v279_v25 = vld [vmem:[#allocation2 + $0x7] sm:$0xff]  ;;  %v432_v28 = vld [vmem:[#allocation7 + $0x58] sm:$0xff]  ;;  %v431_v31 = vld [vmem:[#allocation7 + $0x50] sm:$0xff]  ;;  %v188_v37 = vadd.s32 8, %v1421_v3 }
  0x2c   :  { %1210 = vmatpush.msra.mxu2 %v313_v15  ;;  %v516_v29 = vld [vmem:[#allocation7 + $0x78] sm:$0xff]  ;;  %343 = vmatpush.msra.mxu0 %v313_v15  ;;  %v241_v30 = vld [vmem:[#allocation2 + $0x6] sm:$0xff]  ;;  %v515_v32 = vld [vmem:[#allocation7 + $0x70] sm:$0xff]  ;;  %v190_v56 = vadd.s32 24, %v1421_v3 }
  0x2d   :  { %v1427_v6 = vand.u32 15, %v189_v4  ;;  %v283_v7 = vadd.s32 4294967295, %v1425_v5  ;;  %v245_v8 = vadd.s32 4294967294, %v1425_v5  ;;  %1214 = vmatpush.msra.mxu3 %v274_v16  ;;  %384 = vmatpush.msra.mxu1 %v274_v16  ;;  %v514_v36 = vld [vmem:[#allocation7 + $0x68] sm:$0xff]  ;;  %v600_v38 = vld [vmem:[#allocation7 + $0x98] sm:$0xff]  ;;  %v429_v39 = vld [vmem:[#allocation7 + $0x40] sm:$0xff] }
  0x2e   :  { %1211 = vmatpush.msra.mxu2 %v312_v19  ;;  %344 = vmatpush.msra.mxu0 %v312_v19  ;;  %v513_v40 = vld [vmem:[#allocation7 + $0x60] sm:$0xff]  ;;  %v599_v43 = vld [vmem:[#allocation7 + $0x90] sm:$0xff]  ;;  %v1444_v44 = vand.u32 15, %v188_v37  ;;  %v598_v45 = vld [vmem:[#allocation7 + $0x88] sm:$0xff]  ;;  %v1463_v61 = vand.u32 15, %v190_v56 }
  0x2f   :  { %v285_v13 = vadd.s32 4294967295, %v1427_v6  ;;  %v247_v14 = vadd.s32 4294967294, %v1427_v6  ;;  %vm287_vm1 = vcmp.ge.s32.totalorder %v283_v7, 0  ;;  %vm249_vm2 = vcmp.ge.s32.totalorder %v245_v8, 0  ;;  %1215 = vmatpush.msra.mxu3 %v273_v20  ;;  %385 = vmatpush.msra.mxu1 %v273_v20  ;;  %v282_v41 = vld [vmem:[#allocation2 + $0x1f] sm:$0xff]  ;;  %v280_v46 = vld [vmem:[#allocation2 + $0xf] sm:$0xff] }
  0x30   :  { %v1152_v26 = vsel %vm287_vm1, 1.0, %v1359_v0  ;;  %v1150_v27 = vsel %vm249_vm2, 1.0, %v1359_v0  ;;  %457 = vmatpush.msrb.mxu2 %v432_v28  ;;  %v244_v42 = vld [vmem:[#allocation2 + $0x1e] sm:$0xff]  ;;  %625 = vmatpush.msrb.mxu0 %v600_v38  ;;  %v242_v47 = vld [vmem:[#allocation2 + $0xe] sm:$0xff]  ;;  %v485_v49 = vadd.s32 1, %v1444_v44  ;;  %v569_v52 = vadd.s32 2, %v1444_v44 }
  0x31   :  { %vm289_vm3 = vcmp.ge.s32.totalorder %v285_v13, 0  ;;  %vm251_vm4 = vcmp.ge.s32.totalorder %v247_v14, 0  ;;  %v307_v33 = vmul.f32 %v1152_v26, %v279_v25  ;;  %v269_v34 = vmul.f32 %v1150_v27, %v241_v30  ;;  %541 = vmatpush.msrb.mxu3 %v516_v29  ;;  %v597_v48 = vld [vmem:[#allocation7 + $0x80] sm:$0xff]  ;;  %v1451_v50 = vld [vmem:[#allocation2 + $0x8] sm:$0xff]  ;;  %v481_v53 = vld [vmem:[#allocation2 + $0x11] sm:$0xff] }
  0x32   :  { %v1153_v21 = vsel %vm289_vm3, 1.0, %v1359_v0  ;;  %v1151_v22 = vsel %vm251_vm4, 1.0, %v1359_v0  ;;  %458 = vmatpush.msrb.mxu2 %v431_v31  ;;  %626 = vmatpush.msrb.mxu0 %v599_v43  ;;  %v480_v51 = vld [vmem:[#allocation2 + $0x9] sm:$0xff]  ;;  %vm493_vm5 = vcmp.lt.s32.totalorder %v485_v49, 16  ;;  %vm577_vm6 = vcmp.lt.s32.totalorder %v569_v52, 16  ;;  %v565_v59 = vld [vmem:[#allocation2 + $0x12] sm:$0xff] }
  0x33   :  { %v309_v23 = vmul.f32 %v1153_v21, %v281_v17  ;;  %v271_v24 = vmul.f32 %v1151_v22, %v243_v18  ;;  %542 = vmatpush.msrb.mxu3 %v515_v32  ;;  %1154 = vmatmul.msk.f32.vlgmr.msra.gmra.mxu0 %vm79_vm0, %v307_v33  ;;  %v1166_v54 = vsel %vm493_vm5, 1.0, %v1359_v0  ;;  %v564_v55 = vld [vmem:[#allocation2 + $0xa] sm:$0xff]  ;;  %v1172_v60 = vsel %vm577_vm6, 1.0, %v1359_v0  ;;  %v1470_v1 = vld [vmem:[#allocation2 + $0x18] sm:$0xff]  ;;  %v483_v4 = vld [vmem:[#allocation2 + $0x21] sm:$0xff] }
  0x34   :  { %1158 = vmatmul.msk.f32.vlgmr.msra.gmra.mxu1 %vm79_vm0, %v269_v34  ;;  %459 = vmatpush.msrb.mxu2 %v430_v35  ;;  %v509_v57 = vmul.f32 %v1166_v54, %v481_v53  ;;  %v1460_v58 = vld [vmem:[#allocation2 + $0x10] sm:$0xff]  ;;  %v593_v62 = vmul.f32 %v1172_v60, %v565_v59  ;;  %v487_v63 = vadd.s32 1, %v1463_v61  ;;  %v482_v2 = vld [vmem:[#allocation2 + $0x19] sm:$0xff]  ;;  %v571_v3 = vadd.s32 2, %v1463_v61  ;;  %v567_v11 = vld [vmem:[#allocation2 + $0x22] sm:$0xff] }
  0x35   :  { %1156 = vmatmul.msk.f32.vlgmr.msra.gmra.mxu2 %vm79_vm0, %v309_v23  ;;  %1160 = vmatmul.msk.f32.vlgmr.msra.gmra.mxu3 %vm79_vm0, %v271_v24  ;;  %v566_v8 = vld [vmem:[#allocation2 + $0x1a] sm:$0xff]  ;;  %v647_v27 = vstv %s646_s1  ;;  %v1360_v28 = vmov 0  }
  0x36   :  { %543 = vmatpush.msrb.mxu3 %v514_v36  ;;  %460 = vmatpush.msrb.mxu2 %v429_v39  ;;  %vm495_vm7 = vcmp.lt.s32.totalorder %v487_v63, 16  ;;  %vm579_vm8 = vcmp.lt.s32.totalorder %v571_v3, 16  ;;  %v1478_v10 = vld [vmem:[#allocation2 + $0x20] sm:$0xff] }
  0x37   :  { %627 = vmatpush.msrb.mxu0 %v598_v45  ;;  %v1167_v7 = vsel %vm495_vm7, 1.0, %v1359_v0  ;;  %v1173_v12 = vsel %vm579_vm8, 1.0, %v1359_v0  ;;  %1232 = vset.pattern.permute.xlu0 %v1360_v28 }
  0x38   :  { %544 = vmatpush.msrb.mxu3 %v513_v40  ;;  %v511_v9 = vmul.f32 %v1167_v7, %v483_v4  ;;  %v595_v13 = vmul.f32 %v1173_v12, %v567_v11  ;;  %1233 = vset.pattern.permute.xlu1 %v1360_v28 }
  0x39   :  { %628 = vmatpush.msrb.mxu0 %v597_v48 }
  0x3b   :  { %1155 = vmatmul.msk.f32.gmra.mxu0 %vm79_vm0, %v280_v46 }
  0x3c   :  { %1159 = vmatmul.msk.f32.gmra.mxu1 %vm79_vm0, %v242_v47 }
  0x3d   :  { %1157 = vmatmul.msk.f32.gmra.mxu2 %vm79_vm0, %v282_v41  ;;  %1161 = vmatmul.msk.f32.gmra.mxu3 %vm79_vm0, %v244_v42 }
  0x43   :  { %1174 = vmatmul.msk.f32.vlgmr.msrb.gmra.mxu0 %vm79_vm0, %v564_v55 }
  0x45   :  { %1162 = vmatmul.msk.f32.vlgmr.msrb.gmra.mxu2 %vm79_vm0, %v1451_v50  ;;  %1168 = vmatmul.msk.f32.vlgmr.msrb.gmra.mxu3 %vm79_vm0, %v480_v51 }
  0x4b   :  { %1175 = vmatmul.msk.f32.gmra.mxu0 %vm79_vm0, %v593_v62 }
  0x4d   :  { %1163 = vmatmul.msk.f32.gmra.mxu2 %vm79_vm0, %v1460_v58  ;;  %1169 = vmatmul.msk.f32.gmra.mxu3 %vm79_vm0, %v509_v57 }
  0x53   :  { %1176 = vmatmul.msk.f32.gmra.mxu0 %vm79_vm0, %v566_v8 }
  0x55   :  { %1164 = vmatmul.msk.f32.gmra.mxu2 %vm79_vm0, %v1470_v1  ;;  %1170 = vmatmul.msk.f32.gmra.mxu3 %vm79_vm0, %v482_v2 }
  0x5b   :  { %1177 = vmatmul.msk.f32.gmra.mxu0 %vm79_vm0, %v595_v13 }
  0x5d   :  { %1165 = vmatmul.msk.f32.gmra.mxu2 %vm79_vm0, %v1478_v10  ;;  %1171 = vmatmul.msk.f32.gmra.mxu3 %vm79_vm0, %v511_v9 }
  0xb0   :  { %v346_v14 = vpop.f32.mrf.mxu0 }
  0xb1   :  { %v387_v20 = vpop.f32.mrf.mxu1 }
  0xb2   :  { %v388_v22 = vadd.f32 %v387_v20, %v346_v14 }
  0xb8   :  { %v352_v15 = vpop.f32.mrf.mxu2  ;;  %v393_v16 = vpop.f32.mrf.mxu3 }
  0xb9   :  { %v349_v17 = vpop.f32.mrf.mxu0  ;;  %v390_v26 = vpop.f32.mrf.mxu1  ;;  %v394_v39 = vadd.f32 %v393_v16, %v352_v15 }
  0xba   :  { %v391_v31 = vadd.f32 %v390_v26, %v349_v17 }
  0xc0   :  { %v355_v18 = vpop.f32.mrf.mxu2  ;;  %v396_v19 = vpop.f32.mrf.mxu3 }
  0xc1   :  { %v630_v21 = vpop.f32.mrf.mxu0  ;;  %v397_v52 = vadd.f32 %v396_v19, %v355_v18 }
  0xc8   :  { %v462_v23 = vpop.f32.mrf.mxu2  ;;  %v546_v0 = vpop.f32.mrf.mxu3 }
  0xc9   :  { %v474_v24 = vadd.f32 %v462_v23, %v388_v22  ;;  %v633_v30 = vpop.f32.mrf.mxu0 }
  0xcb   :  { %v558_v25 = vadd.f32 %v546_v0, %v474_v24 }
  0xcd   :  { %v642_v29 = vadd.f32 %v630_v21, %v558_v25 }
  0xcf   :  { %v648_v32 = vadd.f32 %v647_v27, %v642_v29 }
  0xd0   :  { %v465_v33 = vpop.f32.mrf.mxu2  ;;  %v549_v34 = vpop.f32.mrf.mxu3 }
  0xd1   :  { %v1178_v35 = vmul.f32 -1.442695, %v648_v32  ;;  %v475_v36 = vadd.f32 %v465_v33, %v391_v31  ;;  %v636_v41 = vpop.f32.mrf.mxu0 }
  0xd3   :  { %1236 = vpow2.f32 %v1178_v35  ;;  %v559_v37 = vadd.f32 %v549_v34, %v475_v36 }
  0xd5   :  { %v643_v38 = vadd.f32 %v633_v30, %v559_v37 }
  0xd7   :  { %v649_v40 = vadd.f32 %v647_v27, %v643_v38 }
  0xd8   :  { %v468_v42 = vpop.f32.mrf.mxu2  ;;  %v552_v43 = vpop.f32.mrf.mxu3 }
  0xd9   :  { %v1237_v45 = vpop.eup %1236  ;;  %v1179_v46 = vmul.f32 -1.442695, %v649_v40  ;;  %v476_v47 = vadd.f32 %v468_v42, %v394_v39  ;;  %v639_v63 = vpop.f32.mrf.mxu0 }
  0xda   :  { %v664_v48 = vadd.f32 1.0, %v1237_v45 }
  0xdb   :  { %1238 = vpow2.f32 %v1179_v46  ;;  %v560_v49 = vadd.f32 %v552_v43, %v476_v47 }
  0xdc   :  { %1240 = vrcp.f32 %v664_v48  ;;  %v679_v8 = vand.u32 2147483648, %v664_v48  ;;  %v677_v12 = vand.u32 2147483647, %v664_v48  ;;  %vm673_vm10 = vweird.f32 %v664_v48 }
  0xdd   :  { %v644_v51 = vadd.f32 %v636_v41, %v560_v49 }
  0xde   :  { %v680_v18 = vor.u32 1.1754944e-38, %v679_v8  ;;  %vm678_vm12 = vcmp.eq.f32.partialorder %v677_v12, 8.507059e+37  ;;  %v917_v8 = vld [vmem:[#allocation10 + $0x68] sm:$0xff]  ;;  %v975_v12 = vld [vmem:[#allocation10 + $0x98] sm:$0xff] }
  0xdf   :  { %v650_v53 = vadd.f32 %v647_v27, %v644_v51 }
  0xe0   :  { %v471_v54 = vpop.f32.mrf.mxu2  ;;  %v555_v55 = vpop.f32.mrf.mxu3 }
  0xe1   :  { %v1239_v56 = vpop.eup %1238  ;;  %v1180_v57 = vmul.f32 -1.442695, %v650_v53  ;;  %v477_v59 = vadd.f32 %v471_v54, %v397_v52  ;;  %v772_v53 = vld [vmem:[#allocation10 + $0x38] sm:$0xff] }
  0xe2   :  { %v1241_v60 = vpop.eup %1240  ;;  %v665_v62 = vadd.f32 1.0, %v1239_v56  ;;  %v763_v54 = vld [vmem:[#allocation10 + $0x18] sm:$0xff]  ;;  %797 = vmatpush.msrb.mxu1 %v772_v53  ;;  %v771_v56 = vld [vmem:[#allocation10 + $0x30] sm:$0xff]  ;;  %v1022_v53 = vcvt.s32.f32 %v1444_v44 }
  0xe3   :  { %1242 = vpow2.f32 %v1180_v57  ;;  %v561_v2 = vadd.f32 %v555_v55, %v477_v59  ;;  %v669_v3 = vmul.f32 %v1241_v60, %v664_v48  ;;  %vm674_vm9 = vweird.f32 %v1241_v60  ;;  %v762_v55 = vld [vmem:[#allocation10 + $0x10] sm:$0xff]  ;;  %838 = vmatpush.msra.mxu2 %v763_v54  ;;  %v761_v57 = vld [vmem:[#allocation10 + $0x8] sm:$0xff]  ;;  %v760_v59 = vld [vmem:[#allocation10] sm:$0xff] }
  0xe4   :  { %1244 = vrcp.f32 %v665_v62  ;;  %vm675_vm11 = vmor %vm673_vm10, %vm674_vm9  ;;  %v694_v23 = vand.u32 2147483648, %v665_v62  ;;  %v692_v24 = vand.u32 2147483647, %v665_v62  ;;  %vm688_vm14 = vweird.f32 %v665_v62  ;;  %798 = vmatpush.msrb.mxu1 %v771_v56 }
  0xe5   :  { %v645_v4 = vadd.f32 %v639_v63, %v561_v2  ;;  %v670_v7 = vsub.f32 1.0, %v669_v3  ;;  %839 = vmatpush.msra.mxu2 %v762_v55  ;;  %v919_v63 = vld [vmem:[#allocation10 + $0x78] sm:$0xff]  ;;  %v862_v2 = vld [vmem:[#allocation10 + $0x50] sm:$0xff] }
  0xe6   :  { %v695_v29 = vor.u32 1.1754944e-38, %v694_v23  ;;  %vm693_vm1 = vcmp.eq.f32.partialorder %v692_v24, 8.507059e+37  ;;  %v918_v3 = vld [vmem:[#allocation10 + $0x70] sm:$0xff]  ;;  %944 = vmatpush.msra.mxu0 %v919_v63  ;;  %v1235_v63 = vld [vmem:[%s1531_s5] ss:$0 sm:$0xff]  ;;  %s1361_s5 = smov [#allocation12]  }
  0xe7   :  { %v651_v9 = vadd.f32 %v647_v27, %v645_v4  ;;  %v671_v11 = vmul.f32 %v1241_v60, %v670_v7  ;;  %840 = vmatpush.msra.mxu2 %v761_v57  ;;  %v769_v4 = vld [vmem:[#allocation10 + $0x20] sm:$0xff]  ;;  %v861_v7 = vld [vmem:[#allocation10 + $0x48] sm:$0xff]  ;;  %v1021_v57 = vcvt.s32.f32 %v1425_v5 }
  0xe8   :  { %945 = vmatpush.msra.mxu0 %v918_v3 }
  0xe9   :  { %v1243_v13 = vpop.eup %1242  ;;  %v1181_v14 = vmul.f32 -1.442695, %v651_v9  ;;  %v672_v15 = vadd.f32 %v1241_v60, %v671_v11  ;;  %841 = vmatpush.msra.mxu2 %v760_v59  ;;  %v860_v9 = vld [vmem:[#allocation10 + $0x40] sm:$0xff] }
  0xea   :  { %v1245_v16 = vpop.eup %1244  ;;  %v666_v17 = vadd.f32 1.0, %v1243_v13  ;;  %946 = vmatpush.msra.mxu0 %v917_v8  ;;  %v916_v11 = vld [vmem:[#allocation10 + $0x60] sm:$0xff]  ;;  %v974_v13 = vld [vmem:[#allocation10 + $0x90] sm:$0xff] }
  0xeb   :  { %1246 = vpow2.f32 %v1181_v14  ;;  %v676_v19 = vsel %vm675_vm11, %v1241_v60, %v672_v15  ;;  %v684_v20 = vmul.f32 %v1245_v16, %v665_v62  ;;  %vm689_vm13 = vweird.f32 %v1245_v16  ;;  %v863_v60 = vld [vmem:[#allocation10 + $0x58] sm:$0xff]  ;;  %v770_v62 = vld [vmem:[#allocation10 + $0x28] sm:$0xff]  ;;  %v1234_v59 = vld [vmem:[%s1532_s6] ss:$0 sm:$0xff]  ;;  %s1072_s6 = sshll.u32 %s1361_s5, 4  ;;  %s1073_s6 = int_to_ptr.vmem [resolvable:$true] %s1072_s6 }
  0xec   :  { %1248 = vrcp.f32 %v666_v17  ;;  %v681_v21 = vsel %vm678_vm12, %v680_v18, %v676_v19  ;;  %vm690_vm15 = vmor %vm688_vm14, %vm689_vm13  ;;  %v709_v34 = vand.u32 2147483648, %v666_v17  ;;  %v707_v36 = vand.u32 2147483647, %v666_v17  ;;  %888 = vmatpush.msra.mxu3 %v863_v60  ;;  %799 = vmatpush.msrb.mxu1 %v770_v62 }
  0xed   :  { %730 = vperm.xlu0 %1232, %v681_v21   ;;  %v685_v22 = vsub.f32 1.0, %v684_v20  ;;  %vm703_vm3 = vweird.f32 %v666_v17  ;;  %947 = vmatpush.msra.mxu0 %v916_v11  ;;  %v972_v20 = vld [vmem:[#allocation10 + $0x80] sm:$0xff]  ;;  %vm1029_vm10 = vcmp.le.f32.partialorder %v1021_v57, %v1234_v59  ;;  %vm1063_vm13 = vcmask 1041409  }
  0xee   :  { %v710_v39 = vor.u32 1.1754944e-38, %v709_v34  ;;  %vm708_vm5 = vcmp.eq.f32.partialorder %v707_v36, 8.507059e+37  ;;  %889 = vmatpush.msra.mxu3 %v862_v2  ;;  %800 = vmatpush.msrb.mxu1 %v769_v4 }
  0xef   :  { %v686_v0 = vmul.f32 %v1245_v16, %v685_v22 }
  0xf0   :  { %890 = vmatpush.msra.mxu3 %v861_v7  ;;  %1000 = vmatpush.msra.mxu1 %v975_v12 }
  0xf1   :  { %v1247_v25 = vpop.eup %1246  ;;  %v687_v26 = vadd.f32 %v1245_v16, %v686_v0 }
  0xf2   :  { %v1249_v27 = vpop.eup %1248  ;;  %v667_v28 = vadd.f32 1.0, %v1247_v25  ;;  %891 = vmatpush.msra.mxu3 %v860_v9  ;;  %1001 = vmatpush.msra.mxu1 %v974_v13  ;;  %v1037_v9 = vsel %vm1029_vm10, %v1235_v63, -1e+30 }
  0xf3   :  { %v691_v30 = vsel %vm690_vm15, %v1245_v16, %v687_v26  ;;  %v699_v31 = vmul.f32 %v1249_v27, %v666_v17  ;;  %vm704_vm2 = vweird.f32 %v1249_v27  ;;  %v973_v16 = vld [vmem:[#allocation10 + $0x88] sm:$0xff] }
  0xf4   :  { %1250 = vrcp.f32 %v667_v28  ;;  %v696_v32 = vsel %vm693_vm1, %v695_v29, %v691_v30  ;;  %vm705_vm4 = vmor %vm703_vm3, %vm704_vm2  ;;  %v724_v45 = vand.u32 2147483648, %v667_v28  ;;  %v722_v47 = vand.u32 2147483647, %v667_v28  ;;  %1002 = vmatpush.msra.mxu1 %v973_v16 }
  0xf5   :  { %735 = vperm.xlu0 %1232, %v696_v32   ;;  %v700_v33 = vsub.f32 1.0, %v699_v31  ;;  %vm718_vm7 = vweird.f32 %v667_v28 }
  0xf6   :  { %v725_v49 = vor.u32 1.1754944e-38, %v724_v45  ;;  %vm723_vm9 = vcmp.eq.f32.partialorder %v722_v47, 8.507059e+37  ;;  %1003 = vmatpush.msra.mxu1 %v972_v20  ;;  %v1023_v20 = vcvt.s32.f32 %v1427_v6 }
  0xf7   :  { %v701_v35 = vmul.f32 %v1249_v27, %v700_v33 }
  0xf8   :  { %vm1031_vm11 = vcmp.le.f32.partialorder %v1023_v20, %v1234_v59 }
  0xf9   :  { %v702_v37 = vadd.f32 %v1249_v27, %v701_v35 }
  0xfa   :  { %v1251_v38 = vpop.eup %1250 }
  0xfb   :  { %v706_v40 = vsel %vm705_vm4, %v1249_v27, %v702_v37  ;;  %v714_v41 = vmul.f32 %v1251_v38, %v667_v28  ;;  %vm719_vm6 = vweird.f32 %v1251_v38 }
  0xfc   :  { %v711_v42 = vsel %vm708_vm5, %v710_v39, %v706_v40  ;;  %vm720_vm8 = vmor %vm718_vm7, %vm719_vm6 }
  0xfd   :  { %740 = vperm.xlu1 %1233, %v711_v42   ;;  %v715_v43 = vsub.f32 1.0, %v714_v41 }
  0xff   :  { %v716_v46 = vmul.f32 %v1251_v38, %v715_v43 }
 0x101   :  { %v717_v48 = vadd.f32 %v1251_v38, %v716_v46 }
 0x103   :  { %v721_v51 = vsel %vm720_vm8, %v1251_v38, %v717_v48 }
 0x104   :  { %v726_v52 = vsel %vm723_vm9, %v725_v49, %v721_v51 }
 0x105   :  { %745 = vperm.xlu1 %1233, %v726_v52  }
 0x15f   :  { %v731_v14 = vpop.permute.xlu0 %730 }
 0x160   :  { %v748_v15 = vmul.f32 %v731_v14, %v1451_v50 }
 0x162   :  { %752 = vst.msk [vmem:[#allocation2 + $0x8] sm:$0xff] %vm79_vm0, %v748_v15 }
 0x167   :  { %v736_v17 = vpop.permute.xlu0 %735 }
 0x168   :  { %v749_v18 = vmul.f32 %v736_v17, %v1460_v58 }
 0x169   :  { %v756_v19 = vld [vmem:[#allocation2 + $0x8] sm:$0xff] }
 0x16a   :  { %753 = vst.msk [vmem:[#allocation2 + $0x10] sm:$0xff] %vm79_vm0, %v749_v18  ;;  %1186 = vmatmul.msk.f32.vlgmr.msra.gmra.mxu2 %vm79_vm0, %v756_v19 }
 0x16f   :  { %v741_v21 = vpop.permute.xlu1 %740 }
 0x170   :  { %v750_v22 = vmul.f32 %v741_v21, %v1470_v1  ;;  %v1024_v21 = vcvt.s32.f32 %v1463_v61 }
 0x171   :  { %v764_v23 = vld [vmem:[#allocation2 + $0x9] sm:$0xff] }
 0x172   :  { %v757_v0 = vld [vmem:[#allocation2 + $0x10] sm:$0xff]  ;;  %754 = vst.msk [vmem:[#allocation2 + $0x18] sm:$0xff] %vm79_vm0, %v750_v22  ;;  %1182 = vmatmul.msk.f32.vlgmr.msrb.gmra.mxu1 %vm79_vm0, %v764_v23  ;;  %vm1032_vm12 = vcmp.le.f32.partialorder %v1024_v21, %v1234_v59 }
 0x173   :  { %v855_v50 = vld [vmem:[#allocation2 + $0xa] sm:$0xff]  ;;  %1187 = vmatmul.msk.f32.gmra.mxu2 %vm79_vm0, %v757_v0 }
 0x174   :  { %v911_v58 = vld [vmem:[#allocation2 + $0xb] sm:$0xff]  ;;  %1190 = vmatmul.msk.f32.vlgmr.msra.gmra.mxu3 %vm79_vm0, %v855_v50 }
 0x175   :  { %1194 = vmatmul.msk.f32.vlgmr.msra.gmra.mxu0 %vm79_vm0, %v911_v58  ;;  %v967_v35 = vld [vmem:[#allocation2 + $0xc] sm:$0xff] }
 0x177   :  { %v746_v24 = vpop.permute.xlu1 %745 }
 0x178   :  { %v751_v25 = vmul.f32 %v746_v24, %v1478_v10 }
 0x179   :  { %v765_v26 = vld [vmem:[#allocation2 + $0x11] sm:$0xff] }
 0x17a   :  { %v758_v27 = vld [vmem:[#allocation2 + $0x18] sm:$0xff]  ;;  %755 = vst.msk [vmem:[#allocation2 + $0x20] sm:$0xff] %vm79_vm0, %v751_v25  ;;  %1183 = vmatmul.msk.f32.gmra.mxu1 %vm79_vm0, %v765_v26  ;;  %v1039_v26 = vsel %vm1031_vm11, %v1235_v63, -1e+30 }
 0x17b   :  { %v856_v1 = vld [vmem:[#allocation2 + $0x12] sm:$0xff]  ;;  %1188 = vmatmul.msk.f32.gmra.mxu2 %vm79_vm0, %v758_v27 }
 0x17c   :  { %v912_v28 = vld [vmem:[#allocation2 + $0x13] sm:$0xff]  ;;  %1191 = vmatmul.msk.f32.gmra.mxu3 %vm79_vm0, %v856_v1  ;;  %v1040_v1 = vsel %vm1032_vm12, %v1235_v63, -1e+30 }
 0x17d   :  { %1195 = vmatmul.msk.f32.gmra.mxu0 %vm79_vm0, %v912_v28  ;;  %v968_v36 = vld [vmem:[#allocation2 + $0x14] sm:$0xff] }
 0x181   :  { %v766_v29 = vld [vmem:[#allocation2 + $0x19] sm:$0xff]  ;;  %v767_v32 = vld [vmem:[#allocation2 + $0x21] sm:$0xff] }
 0x182   :  { %v759_v30 = vld [vmem:[#allocation2 + $0x20] sm:$0xff]  ;;  %1184 = vmatmul.msk.f32.gmra.mxu1 %vm79_vm0, %v766_v29 }
 0x183   :  { %v857_v31 = vld [vmem:[#allocation2 + $0x1a] sm:$0xff]  ;;  %1189 = vmatmul.msk.f32.gmra.mxu2 %vm79_vm0, %v759_v30  ;;  %v858_v33 = vld [vmem:[#allocation2 + $0x22] sm:$0xff] }
 0x184   :  { %v913_v10 = vld [vmem:[#allocation2 + $0x1b] sm:$0xff]  ;;  %1192 = vmatmul.msk.f32.gmra.mxu3 %vm79_vm0, %v857_v31  ;;  %v914_v34 = vld [vmem:[#allocation2 + $0x23] sm:$0xff] }
 0x185   :  { %1196 = vmatmul.msk.f32.gmra.mxu0 %vm79_vm0, %v913_v10  ;;  %v969_v37 = vld [vmem:[#allocation2 + $0x1c] sm:$0xff]  ;;  %v970_v38 = vld [vmem:[#allocation2 + $0x24] sm:$0xff] }
 0x18a   :  { %1185 = vmatmul.msk.f32.gmra.mxu1 %vm79_vm0, %v767_v32 }
 0x18c   :  { %1193 = vmatmul.msk.f32.gmra.mxu3 %vm79_vm0, %v858_v33 }
 0x18d   :  { %1197 = vmatmul.msk.f32.gmra.mxu0 %vm79_vm0, %v914_v34 }
 0x192   :  { %1198 = vmatmul.msk.f32.vlgmr.msra.gmra.mxu1 %vm79_vm0, %v967_v35 }
 0x19a   :  { %1199 = vmatmul.msk.f32.gmra.mxu1 %vm79_vm0, %v968_v36 }
 0x1a2   :  { %1200 = vmatmul.msk.f32.gmra.mxu1 %vm79_vm0, %v969_v37 }
 0x1aa   :  { %1201 = vmatmul.msk.f32.gmra.mxu1 %vm79_vm0, %v970_v38  ;;  %vm1030_vm0 = vcmp.le.f32.partialorder %v1022_v53, %v1234_v59 }
 0x1ab   :  { %v1038_v4 = vsel %vm1030_vm0, %v1235_v63, -1e+30 }
 0x1ed   :  { %v843_v42 = vpop.f32.mrf.mxu2 }
 0x1ef   :  { %v802_v39 = vpop.f32.mrf.mxu1 }
 0x1f0   :  { %v844_v51 = vadd.f32 %v843_v42, %v802_v39 }
 0x1f2   :  { %v949_v45 = vpop.f32.mrf.mxu0 }
 0x1f6   :  { %v846_v47 = vpop.f32.mrf.mxu2 }
 0x1f7   :  { %v805_v40 = vpop.f32.mrf.mxu1  ;;  %v893_v43 = vpop.f32.mrf.mxu3 }
 0x1f8   :  { %v847_v52 = vadd.f32 %v846_v47, %v805_v40  ;;  %v905_v55 = vadd.f32 %v893_v43, %v844_v51 }
 0x1fa   :  { %v952_v54 = vpop.f32.mrf.mxu0  ;;  %v961_v2 = vadd.f32 %v949_v45, %v905_v55 }
 0x1fe   :  { %v849_v60 = vpop.f32.mrf.mxu2 }
 0x1ff   :  { %v808_v41 = vpop.f32.mrf.mxu1  ;;  %v896_v48 = vpop.f32.mrf.mxu3 }
 0x200   :  { %v906_v56 = vadd.f32 %v896_v48, %v847_v52  ;;  %v850_v13 = vadd.f32 %v849_v60, %v808_v41 }
 0x202   :  { %v962_v3 = vadd.f32 %v952_v54, %v906_v56  ;;  %v955_v11 = vpop.f32.mrf.mxu0 }
 0x206   :  { %v852_v14 = vpop.f32.mrf.mxu2 }
 0x207   :  { %v811_v46 = vpop.f32.mrf.mxu1  ;;  %v899_v62 = vpop.f32.mrf.mxu3 }
 0x208   :  { %v907_v18 = vadd.f32 %v899_v62, %v850_v13  ;;  %v853_v19 = vadd.f32 %v852_v14, %v811_v46 }
 0x20a   :  { %v963_v0 = vadd.f32 %v955_v11, %v907_v18  ;;  %v958_v50 = vpop.f32.mrf.mxu0 }
 0x20f   :  { %v1005_v49 = vpop.f32.mrf.mxu1  ;;  %v902_v16 = vpop.f32.mrf.mxu3 }
 0x210   :  { %v1017_v7 = vadd.f32 %v1005_v49, %v961_v2  ;;  %v908_v22 = vadd.f32 %v902_v16, %v853_v19 }
 0x212   :  { %v1041_v12 = vadd.f32 %v1037_v9, %v1017_v7  ;;  %v964_v25 = vadd.f32 %v958_v50, %v908_v22 }
 0x217   :  { %v1008_v44 = vpop.f32.mrf.mxu1 }
 0x218   :  { %v1018_v8 = vadd.f32 %v1008_v44, %v962_v3 }
 0x21a   :  { %v1042_v5 = vadd.f32 %v1038_v4, %v1018_v8 }
 0x21c   :  { %v1045_v15 = vmax.f32 %v1041_v12, %v1042_v5 }
 0x21e   :  { %v1046_v23 = vrot.slane %v1045_v15, 4 }
 0x21f   :  { %v1011_v17 = vpop.f32.mrf.mxu1 }
 0x220   :  { %v1047_v58 = vmax.f32 %v1045_v15, %v1046_v23  ;;  %v1019_v24 = vadd.f32 %v1011_v17, %v963_v0 }
 0x222   :  { %v1048_v29 = vrot.slane %v1047_v58, 2  ;;  %v1043_v30 = vadd.f32 %v1039_v26, %v1019_v24 }
 0x224   :  { %v1049_v6 = vmax.f32 %v1047_v58, %v1048_v29 }
 0x226   :  { %v1050_v33 = vrot.slane %v1049_v6, 1 }
 0x227   :  { %v1014_v27 = vpop.f32.mrf.mxu1 }
 0x228   :  { %v1020_v28 = vadd.f32 %v1014_v27, %v964_v25  ;;  %v1051_v37 = vmax.f32 %v1049_v6, %v1050_v33 }
 0x22a   :  { %v1044_v31 = vadd.f32 %v1040_v1, %v1020_v28  ;;  %v1059_v39 = vmax.f32 %v1051_v37, 0.0 }
 0x22c   :  { %v1052_v10 = vmax.f32 %v1043_v30, %v1044_v31 }
 0x22e   :  { %v1053_v32 = vrot.slane %v1052_v10, 4 }
 0x230   :  { %v1054_v61 = vmax.f32 %v1052_v10, %v1053_v32 }
 0x232   :  { %v1055_v34 = vrot.slane %v1054_v61, 2 }
 0x234   :  { %v1056_v35 = vmax.f32 %v1054_v61, %v1055_v34 }
 0x236   :  { %v1057_v36 = vrot.slane %v1056_v35, 1 }
 0x238   :  { %v1058_v38 = vmax.f32 %v1056_v35, %v1057_v36 }
 0x23a   :  { %v1060_v40 = vmax.f32 %v1058_v38, 0.0 }
 0x23c   :  { %v1064_v41 = vsel %vm1063_vm13, %v1060_v40, %v1059_v39 }
 0x23d   :  { %1066 = vst [vmem:[#allocation12] sm:$0x3] %v1064_v41 }
 0x23e   :  { %1077 = dma.vmem_to_hbm [thread:$0]  %s1073_s6, 32, %s1075_s27, [#allocation9]  }
 0x23f   :  { %1348 = dma.done.wait [#allocation9], 32  }
 0x240   :  { %1349 = vsyncadd [#allocation9], 4294967264 }
 0x241   :  { %1082 = vsyncpa [#allocation8], 1 }
 0x242   :  { %1083 = vsyncpa [#allocation11], 1 }
 0x243   :  { %1084 = vsyncpa [#allocation9], 1 }
 0x244   :  { %1085 = vsyncmov [#allocation3] }
 0x247   :  { %s1086_s28 = vpop.sfrf %1085 }
 0x248   :  { %p1202_p1 = scmp.ne.s32.totalorder %s1086_s28, 0 }
 0x24a   :  { %1090 = shalt.err (%p1202_p1)  }
 0x24b   :  { %1092 = vsyncmov [#allocation3 + $0x1] }
 0x24e   :  { %s1093_s29 = vpop.sfrf %1092 }
 0x24f   :  { %p1203_p2 = scmp.ne.s32.totalorder %s1093_s29, 0 }
 0x251   :  { %1097 = shalt.err (%p1203_p2)  }

</bundles_post_ra>
